<compile_context>
chip_gen: v5e
topology: v5e:2x2
jax: 0.10.0
libtpu: 0.0.40
codegen_flags: <defaults>
</compile_context>

<pallas_src>
import functools

import jax
import jax.numpy as jnp
from jax.experimental import pallas as pl
from jax.experimental.pallas import tpu as pltpu

BN_EPS = 1e-5
LEAKY_SLOPE = 0.2
_TILE_N = 1024   # rows per grid step
_LANE = 128      # TPU lane width; feature dims padded to multiples of this


def _round_up(x, m):
    return (x + m - 1) // m * m


def _pad2(a, rows, cols):
    """Zero-pad a 2-D array to (rows, cols), f32."""
    a = jnp.asarray(a, jnp.float32)
    out = jnp.zeros((rows, cols), jnp.float32)
    return out.at[: a.shape[0], : a.shape[1]].set(a)


# ---------------------------------------------------------------------------
# Kernels
# ---------------------------------------------------------------------------
def _stage_stats_kernel(x_ref, w_ref, pre_ref, bias_ref, out_ref, stats_ref,
                        *, n_valid):
    """a = leaky_relu((x*scale + shift) @ W + b); emit masked per-tile
    per-feature [sum, sum_of_squares] for the next layer's BatchNorm."""
    tile_n = x_ref.shape[0]
    out_f = out_ref.shape[1]

    # Previous layer's BN folded into one FMA (identity for the first layer).
    xn = x_ref[...] * pre_ref[0:1, :] + pre_ref[1:2, :]

    # bf16 MXU inputs, f32 accumulate.
    h = jnp.dot(xn.astype(jnp.bfloat16), w_ref[...],
                preferred_element_type=jnp.float32) + bias_ref[...]
    a = jnp.where(h >= 0, h, LEAKY_SLOPE * h)
    out_ref[...] = a

    # Partial BN statistics for this tile; mask batch-padding rows.
    row = (jax.lax.broadcasted_iota(jnp.int32, (tile_n, out_f), 0)
           + pl.program_id(0) * tile_n)
    am = jnp.where(row < n_valid, a, 0.0)
    s = jnp.sum(am, axis=0, keepdims=True)
    ss = jnp.sum(am * am, axis=0, keepdims=True)
    stats_ref[...] = jnp.concatenate([s, ss], axis=0)[None, :, :]


def _stage_final_kernel(x_ref, w_ref, pre_ref, bias_ref, out_ref):
    """y = (x*scale + shift) @ W + b   (no activation, no stats)."""
    xn = x_ref[...] * pre_ref[0:1, :] + pre_ref[1:2, :]
    out_ref[...] = jnp.dot(xn.astype(jnp.bfloat16), w_ref[...],
                           preferred_element_type=jnp.float32) + bias_ref[...]


# ---------------------------------------------------------------------------
# Stage driver
# ---------------------------------------------------------------------------
def _run_stage(x_pad, w_bf16, pre, bias, *, n_valid, with_stats):
    n_pad, in_pad = x_pad.shape
    out_pad = w_bf16.shape[1]
    tile_n = min(n_pad, _TILE_N)
    grid_n = n_pad // tile_n

    in_specs = [
        pl.BlockSpec((tile_n, in_pad), lambda i: (i, 0)),    # activations: tiled over N
        pl.BlockSpec((in_pad, out_pad), lambda i: (0, 0)),   # weight: VMEM-resident
        pl.BlockSpec((2, in_pad), lambda i: (0, 0)),         # packed [scale; shift]
        pl.BlockSpec((1, out_pad), lambda i: (0, 0)),        # bias
    ]
    cp = pltpu.CompilerParams(
        dimension_semantics=("parallel",),
        vmem_limit_bytes=32 * 1024 * 1024,
    )

    if with_stats:
        kernel = functools.partial(_stage_stats_kernel, n_valid=n_valid)
        out_shape = (
            jax.ShapeDtypeStruct((n_pad, out_pad), jnp.float32),
            jax.ShapeDtypeStruct((grid_n, 2, out_pad), jnp.float32),
        )
        out_specs = (
            pl.BlockSpec((tile_n, out_pad), lambda i: (i, 0)),
            pl.BlockSpec((1, 2, out_pad), lambda i: (i, 0, 0)),
        )
    else:
        kernel = _stage_final_kernel
        out_shape = jax.ShapeDtypeStruct((n_pad, out_pad), jnp.float32)
        out_specs = pl.BlockSpec((tile_n, out_pad), lambda i: (i, 0))

    return pl.pallas_call(
        kernel,
        grid=(grid_n,),
        in_specs=in_specs,
        out_specs=out_specs,
        out_shape=out_shape,
        compiler_params=cp,
    )(x_pad, w_bf16, pre, bias)


def _bn_scale_shift(partial_stats, gamma_pad, beta_pad, n_valid):
    """Combine per-tile [sum, sumsq] -> per-feature (scale, shift) for BN."""
    s = jnp.sum(partial_stats[:, 0, :], axis=0)
    ss = jnp.sum(partial_stats[:, 1, :], axis=0)
    mu = s / n_valid
    var = jnp.maximum(ss / n_valid - mu * mu, 0.0)       # biased var (training mode)
    scale = gamma_pad * jax.lax.rsqrt(var + BN_EPS)
    shift = beta_pad - mu * scale
    return jnp.stack([scale, shift], axis=0)             # (2, feat_pad) f32


# ---------------------------------------------------------------------------
# Public forward + reference
# ---------------------------------------------------------------------------
def option_processor_forward(parameters, params):
    """parameters: (..., indim). Returns (..., z_dim). Matches PyTorch training
    mode forward of OptionProcessor."""
    *lead, indim = parameters.shape
    n = 1
    for d in lead:
        n *= d
    h_dim = params["w1"].shape[0]
    z_dim = params["w2"].shape[1]

    in_pad = _round_up(indim, _LANE)
    h_pad = _round_up(h_dim, _LANE)
    z_pad = _round_up(z_dim, _LANE)
    n_pad = _round_up(n, 8) if n <= _TILE_N else _round_up(n, _TILE_N)

    x = jnp.asarray(parameters, jnp.float32).reshape(n, indim)
    x_pad = _pad2(x, n_pad, in_pad)

    w_in = _pad2(params["w_in"], in_pad, h_pad).astype(jnp.bfloat16)
    w1 = _pad2(params["w1"], h_pad, h_pad).astype(jnp.bfloat16)
    w2 = _pad2(params["w2"], h_pad, z_pad).astype(jnp.bfloat16)
    b_in = _pad2(params["b_in"], 1, h_pad)
    b1 = _pad2(params["b1"], 1, h_pad)
    b2 = _pad2(params["b2"], 1, z_pad)
    g1 = _pad2(params["g1"], 1, h_pad)[0]
    be1 = _pad2(params["be1"], 1, h_pad)[0]
    g2 = _pad2(params["g2"], 1, h_pad)[0]
    be2 = _pad2(params["be2"], 1, h_pad)[0]

    # Identity (scale=1, shift=0) for the first stage.
    pre0 = jnp.concatenate(
        [jnp.ones((1, in_pad), jnp.float32), jnp.zeros((1, in_pad), jnp.float32)],
        axis=0)

    # Stage 1: a1 = leaky(x @ W_in + b_in), plus BN1 partial stats.
    a1, ps1 = _run_stage(x_pad, w_in, pre0, b_in, n_valid=n, with_stats=True)
    pre1 = _bn_scale_shift(ps1, g1, be1, n)
    # Stage 2: a2 = leaky(bn1(a1) @ W1 + b1), plus BN2 partial stats.
    a2, ps2 = _run_stage(a1, w1, pre1, b1, n_valid=n, with_stats=True)
    pre2 = _bn_scale_shift(ps2, g2, be2, n)
    # Stage 3: y = bn2(a2) @ W2 + b2.
    y = _run_stage(a2, w2, pre2, b2, n_valid=n, with_stats=False)

    return y[:n, :z_dim].reshape(*lead, z_dim)


def option_processor_reference(parameters, params):
    """Pure-JAX f32 reference matching PyTorch training-mode forward."""
    *lead, indim = parameters.shape
    x = jnp.asarray(parameters, jnp.float32).reshape(-1, indim)

    def bn(a, g, be):
        mu = jnp.mean(a, axis=0, keepdims=True)
        var = jnp.mean((a - mu) ** 2, axis=0, keepdims=True)
        return (a - mu) / jnp.sqrt(var + BN_EPS) * g + be

    def lrelu(h):
        return jnp.where(h >= 0, h, LEAKY_SLOPE * h)

    h = x @ params["w_in"] + params["b_in"]
    h = bn(lrelu(h), params["g1"], params["be1"])
    h = h @ params["w1"] + params["b1"]
    h = bn(lrelu(h), params["g2"], params["be2"])
    h = h @ params["w2"] + params["b2"]
    return h.reshape(*lead, -1)


def init_params(key, indim, h_dim, z_dim):
    ks = jax.random.split(key, 6)
    scale = 0.1
    return {
        # Linear weights stored as (in, out) so the kernel does x @ W + b.
        "w_in": scale * jax.random.normal(ks[0], (indim, h_dim), jnp.float32),
        "b_in": scale * jax.random.normal(ks[1], (1, h_dim), jnp.float32),
        "w1":   scale * jax.random.normal(ks[2], (h_dim, h_dim), jnp.float32),
        "b1":   scale * jax.random.normal(ks[3], (1, h_dim), jnp.float32),
        "w2":   scale * jax.random.normal(ks[4], (h_dim, z_dim), jnp.float32),
        "b2":   scale * jax.random.normal(ks[5], (1, z_dim), jnp.float32),
        # BatchNorm affine params (PyTorch default init: gamma=1, beta=0).
        "g1":  jnp.ones((1, h_dim), jnp.float32),
        "be1": jnp.zeros((1, h_dim), jnp.float32),
        "g2":  jnp.ones((1, h_dim), jnp.float32),
        "be2": jnp.zeros((1, h_dim), jnp.float32),
    }


if __name__ == "__main__":
    indim, h_dim, z_dim = 16, 32, 8
    key = jax.random.PRNGKey(0)
    k_x, k_p, k_x2 = jax.random.split(key, 3)
    params = init_params(k_p, indim, h_dim, z_dim)

    # Small case consistent with the module: (B, S, indim) = (2, 8, 16).
    B, S = 2, 8
    parameters = jax.random.normal(k_x, (B, S, indim), jnp.float32)
    out = option_processor_forward(parameters, params)
    out = jax.block_until_ready(out)
    ref = option_processor_reference(parameters, params)
    assert out.shape == (B, S, z_dim), out.shape
    err = float(jnp.max(jnp.abs(out - ref)))
    assert jnp.allclose(out, ref, atol=3e-2, rtol=3e-2), err

    # Gridded path (N > tile): exercises batch tiling + masked stats rows.
    N2 = 2100
    parameters2 = jax.random.normal(k_x2, (N2, indim), jnp.float32)
    out2 = option_processor_forward(parameters2, params)
    out2 = jax.block_until_ready(out2)
    ref2 = option_processor_reference(parameters2, params)
    assert out2.shape == (N2, z_dim), out2.shape
    err2 = float(jnp.max(jnp.abs(out2 - ref2)))
    assert jnp.allclose(out2, ref2, atol=3e-2, rtol=3e-2), err2

    print("KERNEL_OK")
</pallas_src>

<mosaic_0001>
module attributes {stable_mosaic.version = 11 : i64} {
  func.func @_stage_stats_kernel(%arg0: i32, %arg1: memref<16x128xf32, #tpu.memory_space<vmem>>, %arg2: memref<128x128xbf16, #tpu.memory_space<vmem>>, %arg3: memref<2x128xf32, #tpu.memory_space<vmem>>, %arg4: memref<1x128xf32, #tpu.memory_space<vmem>>, %arg5: memref<16x128xf32, #tpu.memory_space<vmem>>, %arg6: memref<1x2x128xf32, #tpu.memory_space<vmem>>) attributes {dimension_semantics = [#tpu.dimension_semantics<parallel>], iteration_bounds = array<i64: 1>, scalar_prefetch = 0 : i64, scratch_operands = 0 : i64, tpu.core_type = #tpu.core_type<tc>, window_params = [{transform_indices = @transform_0, window_bounds = array<i64: 16, 128>}, {pipeline_mode = #tpu.pipeline_mode<synchronous>, transform_indices = @transform_1, window_bounds = array<i64: 128, 128>}, {pipeline_mode = #tpu.pipeline_mode<synchronous>, transform_indices = @transform_2, window_bounds = array<i64: 2, 128>}, {pipeline_mode = #tpu.pipeline_mode<synchronous>, transform_indices = @transform_3, window_bounds = array<i64: 1, 128>}, {transform_indices = @transform_4, window_bounds = array<i64: 16, 128>}, {transform_indices = @transform_5, window_bounds = array<i64: 1, 2, 128>}]} {
    %c0 = arith.constant 0 : index
    %c0_0 = arith.constant 0 : index
    %0 = vector.load %arg1[%c0, %c0_0] : memref<16x128xf32, #tpu.memory_space<vmem>>, vector<16x128xf32>
    %c0_1 = arith.constant 0 : index
    %c0_2 = arith.constant 0 : index
    %1 = vector.load %arg3[%c0_1, %c0_2] : memref<2x128xf32, #tpu.memory_space<vmem>>, vector<1x128xf32>
    %2 = vector.broadcast %1 : vector<1x128xf32> to vector<16x128xf32>
    %3 = arith.mulf %0, %2 : vector<16x128xf32>
    %c1 = arith.constant 1 : index
    %c0_3 = arith.constant 0 : index
    %4 = vector.load %arg3[%c1, %c0_3] : memref<2x128xf32, #tpu.memory_space<vmem>>, vector<1x128xf32>
    %5 = vector.broadcast %4 : vector<1x128xf32> to vector<16x128xf32>
    %6 = arith.addf %3, %5 : vector<16x128xf32>
    %7 = arith.truncf %6 : vector<16x128xf32> to vector<16x128xbf16>
    %c0_4 = arith.constant 0 : index
    %c0_5 = arith.constant 0 : index
    %8 = vector.load %arg2[%c0_4, %c0_5] : memref<128x128xbf16, #tpu.memory_space<vmem>>, vector<128x128xbf16>
    %cst = arith.constant dense<0.000000e+00> : vector<16x128xf32>
    %9 = tpu.matmul %7, %8, %cst {dimension_numbers = #tpu.dot_dimension_numbers<[1], [0], [0], [1], [0, 0, 1, 1], [], []>} : vector<16x128xbf16>, vector<128x128xbf16>, vector<16x128xf32> -> vector<16x128xf32>
    %c0_6 = arith.constant 0 : index
    %c0_7 = arith.constant 0 : index
    %10 = vector.load %arg4[%c0_6, %c0_7] : memref<1x128xf32, #tpu.memory_space<vmem>>, vector<1x128xf32>
    %11 = vector.broadcast %10 : vector<1x128xf32> to vector<16x128xf32>
    %12 = arith.addf %9, %11 : vector<16x128xf32>
    %cst_8 = arith.constant 0.000000e+00 : f32
    %13 = vector.broadcast %cst_8 : f32 to vector<16x128xf32>
    %14 = arith.cmpf oge, %12, %13 : vector<16x128xf32>
    %cst_9 = arith.constant 2.000000e-01 : f32
    %15 = vector.broadcast %cst_9 : f32 to vector<16x128xf32>
    %16 = arith.mulf %15, %12 : vector<16x128xf32>
    %17 = arith.select %14, %12, %16 : vector<16x128xi1>, vector<16x128xf32>
    %c0_10 = arith.constant 0 : index
    %c0_11 = arith.constant 0 : index
    %18 = vector.load %arg5[%c0_10, %c0_11] : memref<16x128xf32, #tpu.memory_space<vmem>>, vector<16x128xf32>
    tpu.vector_store %arg5[%c0_10, %c0_11], %17 {strides = array<i32>} : memref<16x128xf32, #tpu.memory_space<vmem>>, vector<16x128xf32>,
    %19 = tpu.iota {dimensions = array<i32: 0>} : vector<16x128xi32>
    %c16_i32 = arith.constant 16 : i32
    %20 = arith.muli %arg0, %c16_i32 : i32
    %21 = vector.broadcast %20 : i32 to vector<16x128xi32>
    %22 = arith.addi %19, %21 : vector<16x128xi32>
    %c16_i32_12 = arith.constant 16 : i32
    %23 = vector.broadcast %c16_i32_12 : i32 to vector<16x128xi32>
    %24 = arith.cmpi slt, %22, %23 : vector<16x128xi32>
    %cst_13 = arith.constant 0.000000e+00 : f32
    %25 = vector.broadcast %cst_13 : f32 to vector<16x128xf32>
    %26 = arith.select %24, %17, %25 : vector<16x128xi1>, vector<16x128xf32>
    %cst_14 = arith.constant dense<0.000000e+00> : vector<128xf32>
    %27 = vector.multi_reduction <add>, %26, %cst_14 [0] : vector<16x128xf32> to vector<128xf32>
    %28 = vector.shape_cast %27 : vector<128xf32> to vector<1x128xf32>
    %29 = arith.mulf %26, %26 : vector<16x128xf32>
    %cst_15 = arith.constant dense<0.000000e+00> : vector<128xf32>
    %30 = vector.multi_reduction <add>, %29, %cst_15 [0] : vector<16x128xf32> to vector<128xf32>
    %31 = vector.shape_cast %30 : vector<128xf32> to vector<1x128xf32>
    %32 = tpu.concatenate %28, %31 in 0 : vector<1x128xf32>, vector<1x128xf32> -> vector<2x128xf32>
    %33 = vector.shape_cast %32 : vector<2x128xf32> to vector<1x2x128xf32>
    %c0_16 = arith.constant 0 : index
    %c0_17 = arith.constant 0 : index
    %c0_18 = arith.constant 0 : index
    %34 = vector.load %arg6[%c0_16, %c0_17, %c0_18] : memref<1x2x128xf32, #tpu.memory_space<vmem>>, vector<1x2x128xf32>
    tpu.vector_store %arg6[%c0_16, %c0_17, %c0_18], %33 {strides = array<i32>} : memref<1x2x128xf32, #tpu.memory_space<vmem>>, vector<1x2x128xf32>,
    return
  }
  func.func @transform_0(%arg0: i32) -> (i32, i32) {
    %c0_i32 = arith.constant 0 : i32
    %c0_i32_0 = arith.constant 0 : i32
    return %arg0, %c0_i32 : i32, i32
  }
  func.func @transform_1(%arg0: i32) -> (i32, i32) {
    %c0_i32 = arith.constant 0 : i32
    %c0_i32_0 = arith.constant 0 : i32
    %c0_i32_1 = arith.constant 0 : i32
    return %c0_i32, %c0_i32_0 : i32, i32
  }
  func.func @transform_2(%arg0: i32) -> (i32, i32) {
    %c0_i32 = arith.constant 0 : i32
    %c0_i32_0 = arith.constant 0 : i32
    %c0_i32_1 = arith.constant 0 : i32
    return %c0_i32, %c0_i32_0 : i32, i32
  }
  func.func @transform_3(%arg0: i32) -> (i32, i32) {
    %c0_i32 = arith.constant 0 : i32
    %c0_i32_0 = arith.constant 0 : i32
    %c0_i32_1 = arith.constant 0 : i32
    return %c0_i32, %c0_i32_0 : i32, i32
  }
  func.func @transform_4(%arg0: i32) -> (i32, i32) {
    %c0_i32 = arith.constant 0 : i32
    %c0_i32_0 = arith.constant 0 : i32
    return %arg0, %c0_i32 : i32, i32
  }
  func.func @transform_5(%arg0: i32) -> (i32, i32, i32) {
    %c0_i32 = arith.constant 0 : i32
    %c0_i32_0 = arith.constant 0 : i32
    %c0_i32_1 = arith.constant 0 : i32
    return %arg0, %c0_i32, %c0_i32_0 : i32, i32, i32
  }
}

</mosaic_0001>

<bundles_post_ra>
// kernel: tpu_custom_call.1
= control target key start
LH: loop header
LB: loop body
LE: loop exit
PB: predicated region body
PF: predicated region fallthrough
CT: control target
= control target key end

     0   :  { %11 = vsyncpa [#allocation3], 0  ;;  %s476_s0 = inlined_call_operand.hbm [shape: f32[16,128], index: 0, kind: input, shape index: {}]   ;;  %s477_s1 = inlined_call_operand.hbm [shape: bf16[128,128], index: 1, kind: input, shape index: {}]   ;;  %s478_s2 = inlined_call_operand.hbm [shape: f32[2,128], index: 2, kind: input, shape index: {}]   ;;  %s479_s3 = inlined_call_operand.vmem [shape: f32[1,128], index: 3, kind: input, shape index: {}]   ;;  %s480_s4 = inlined_call_operand.hbm [shape: f32[16,128], index: 4, kind: output, shape index: {0}]   ;;  %s481_s5 = inlined_call_operand.hbm [shape: f32[1,2,128], index: 5, kind: output, shape index: {1}]  }
   0x1   :  { %12 = vsyncpa [#allocation6], 0 }
   0x2   :  { %13 = vsyncpa [#allocation4], 0  ;;  %s32_s20 = sshll.u32 %s477_s1, 4  ;;  %s33_s20 = int_to_ptr.hbm [resolvable:$true] %s32_s20 }
   0x3   :  { %14 = vsyncpa [#allocation10], 0  ;;  %s413_s21 = smov [#allocation5]   ;;  %s19_s25 = sshll.u32 %s476_s0, 4  ;;  %s20_s25 = int_to_ptr.hbm [resolvable:$true] %s19_s25 }
   0x4   :  { %s34_s22 = sshll.u32 %s413_s21, 4  ;;  %s414_s26 = smov 64   ;;  %s35_s22 = int_to_ptr.vmem [resolvable:$true] %s34_s22 }
   0x5   :  { %s415_s27 = smov 4   ;;  %s416_s28 = smov [#allocation2]  }
   0x6   :  { %40 = dma.hbm_to_vmem [thread:$0]  %s33_s20, 1024, %s35_s22, [#allocation6], %s414_s26, %s414_s26, %s415_s27  }
   0x7   :  { %s21_s29 = sshll.u32 %s416_s28, 4  ;;  %s417_s30 = smov 128   ;;  %s22_s29 = int_to_ptr.vmem [resolvable:$true] %s21_s29 }
   0x8   :  { %s418_s6 = smov 8   ;;  %s46_s8 = sshll.u32 %s478_s2, 4  ;;  %s47_s8 = int_to_ptr.hbm [resolvable:$true] %s46_s8 }
   0x9   :  { %27 = dma.hbm_to_vmem [thread:$0]  %s20_s25, 256, %s22_s29, [#allocation3], %s417_s30, %s417_s30, %s418_s6  }
   0xa   :  { %s419_s9 = smov [#allocation7]  }
   0xb   :  { %s48_s0 = sshll.u32 %s419_s9, 4  ;;  %s49_s0 = int_to_ptr.vmem [resolvable:$true] %s48_s0 }
   0xc   :  { %51 = dma.hbm_to_vmem [thread:$0]  %s47_s8, 32, %s49_s0, [#allocation6]  }
   0xd   :  { %405 = dma.done.wait [#allocation3], 256  }
   0xe   :  { %406 = vsyncadd [#allocation3], 4294967040 }
   0xf   :  { %407 = dma.done.wait [#allocation6], 1056  }
  0x10   :  { %408 = vsyncadd [#allocation6], 4294966240  ;;  %v272_v0 = vld [vmem:[#allocation5 + $0x38] sm:$0xff]  ;;  %v271_v1 = vld [vmem:[#allocation5 + $0x30] sm:$0xff]  ;;  %s420_s11 = smov [#allocation8]   ;;  %s203_s15 = sshll.u32 %s480_s4, 4  ;;  %s204_s15 = int_to_ptr.hbm [resolvable:$true] %s203_s15 }
  0x11   :  { %145 = vmatpush.bf16.msra.mxu0 %v272_v0  ;;  %v270_v2 = vld [vmem:[#allocation5 + $0x28] sm:$0xff]  ;;  %v269_v3 = vld [vmem:[#allocation5 + $0x20] sm:$0xff]  ;;  %v268_v4 = vld [vmem:[#allocation5 + $0x18] sm:$0xff]  ;;  %s201_s12 = sshll.u32 %s420_s11, 4  ;;  %s217_s18 = sshll.u32 %s481_s5, 4  ;;  %vm194_vm2 = vcmask 1040384   ;;  %s202_s12 = int_to_ptr.vmem [resolvable:$true] %s201_s12  ;;  %s218_s18 = int_to_ptr.hbm [resolvable:$true] %s217_s18 }
  0x12   :  { %v282_v5 = vld [vmem:[#allocation7] ss:$0 sm:$0xff]  ;;  %v267_v6 = vld [vmem:[#allocation5 + $0x10] sm:$0xff]  ;;  %v67_v8 = vld [vmem:[#allocation2 + $0x8] sm:$0xff] }
  0x13   :  { %v66_v7 = vld [vmem:[#allocation2] sm:$0xff]  ;;  %v71_v10 = vmul.f32 %v282_v5, %v67_v8  ;;  %v283_v11 = vld [vmem:[#allocation7 + $0x1] ss:$0 sm:$0xff]  ;;  %v266_v12 = vld [vmem:[#allocation5 + $0x8] sm:$0xff] }
  0x14   :  { %v70_v9 = vmul.f32 %v282_v5, %v66_v7  ;;  %v265_v15 = vld [vmem:[#allocation5] sm:$0xff]  ;;  %v284_v17 = vld [vmem:[%s479_s3] ss:$0 sm:$0xff]  ;;  %s421_s3 = smov [#allocation9]  }
  0x15   :  { %146 = vmatpush.bf16.msra.mxu0 %v271_v1  ;;  %v75_v14 = vadd.f32 %v283_v11, %v71_v10  ;;  %s215_s4 = sshll.u32 %s421_s3, 4  ;;  %s216_s4 = int_to_ptr.vmem [resolvable:$true] %s215_s4 }
  0x16   :  { %v74_v13 = vadd.f32 %v283_v11, %v70_v9 }
  0x18   :  { %v76_v16 = vpack.c.bf16 %v75_v14, %v74_v13 }
  0x19   :  { %147 = vmatpush.bf16.msra.mxu0 %v270_v2 }
  0x1d   :  { %148 = vmatpush.bf16.msra.mxu0 %v269_v3 }
  0x21   :  { %149 = vmatpush.bf16.msra.mxu0 %v268_v4 }
  0x25   :  { %150 = vmatpush.bf16.msra.mxu0 %v267_v6 }
  0x29   :  { %151 = vmatpush.bf16.msra.mxu0 %v266_v12 }
  0x2d   :  { %152 = vmatpush.bf16.msra.mxu0 %v265_v15 }
  0x30   :  { %153 = vmatmul.bf16.vlgmr.msra.gmra.mxu0 %v76_v16 }
  0xad   :  { %v154_v18 = vpop.f32.mrf.mxu0 }
  0xae   :  { %v155_v19 = vadd.f32 %v284_v17, %v154_v18 }
  0xb0   :  { %vm159_vm0 = vcmp.ge.f32.partialorder %v155_v19, 0.0  ;;  %v161_v20 = vmul.f32 0.2, %v155_v19 }
  0xb2   :  { %v163_v21 = vsel %vm159_vm0, %v155_v19, %v161_v20 }
  0xb3   :  { %165 = vst [vmem:[#allocation8] sm:$0xff] %v163_v21  ;;  %v185_v26 = vmul.f32 %v163_v21, %v163_v21 }
  0xb5   :  { %v156_v22 = vpop.f32.mrf.mxu0 }
  0xb6   :  { %v157_v23 = vadd.f32 %v284_v17, %v156_v22 }
  0xb8   :  { %vm160_vm1 = vcmp.ge.f32.partialorder %v157_v23, 0.0  ;;  %v162_v24 = vmul.f32 0.2, %v157_v23 }
  0xba   :  { %v164_v25 = vsel %vm160_vm1, %v157_v23, %v162_v24 }
  0xbb   :  { %v178_v27 = vadd.f32 %v164_v25, %v163_v21  ;;  %v186_v28 = vmul.f32 %v164_v25, %v164_v25  ;;  %166 = vst [vmem:[#allocation8 + $0x8] sm:$0xff] %v164_v25 }
  0xbc   :  { %209 = dma.vmem_to_hbm [thread:$0]  %s202_s12, 256, %s204_s15, [#allocation4], %s417_s30, %s417_s30, %s418_s6  }
  0xbd   :  { %v179_v29 = vrot.slane %v178_v27, 4  ;;  %v187_v30 = vadd.f32 %v186_v28, %v185_v26 }
  0xbf   :  { %v180_v31 = vadd.f32 %v179_v29, %v178_v27  ;;  %v188_v32 = vrot.slane %v187_v30, 4 }
  0xc1   :  { %v181_v33 = vrot.slane %v180_v31, 2  ;;  %v189_v34 = vadd.f32 %v188_v32, %v187_v30 }
  0xc3   :  { %v182_v35 = vadd.f32 %v181_v33, %v180_v31  ;;  %v190_v36 = vrot.slane %v189_v34, 2 }
  0xc5   :  { %v183_v37 = vrot.slane %v182_v35, 1  ;;  %v191_v38 = vadd.f32 %v190_v36, %v189_v34 }
  0xc7   :  { %v192_v39 = vrot.slane %v191_v38, 1  ;;  %v184_v40 = vadd.f32 %v183_v37, %v182_v35 }
  0xc9   :  { %v193_v41 = vadd.f32 %v192_v39, %v191_v38 }
  0xcb   :  { %v195_v42 = vsel %vm194_vm2, %v184_v40, %v193_v41 }
  0xcc   :  { %196 = vst [vmem:[#allocation9] sm:$0x3] %v195_v42 }
  0xcd   :  { %220 = dma.vmem_to_hbm [thread:$0]  %s216_s4, 32, %s218_s18, [#allocation10]  }
  0xce   :  { %409 = dma.done.wait [#allocation4], 256  }
  0xcf   :  { %410 = vsyncadd [#allocation4], 4294967040 }
  0xd0   :  { %411 = dma.done.wait [#allocation10], 32  }
  0xd1   :  { %412 = vsyncadd [#allocation10], 4294967264 }
  0xd2   :  { %229 = vsyncpa [#allocation3], 1 }
  0xd3   :  { %230 = vsyncpa [#allocation6], 1 }
  0xd4   :  { %231 = vsyncpa [#allocation4], 1 }
  0xd5   :  { %232 = vsyncpa [#allocation10], 1 }

</bundles_post_ra>
